<compile_context>
chip_gen: v5e
topology: v5e:2x2
jax: 0.10.0
libtpu: 0.0.40
codegen_flags: <defaults>
</compile_context>

<pallas_src>
import functools

import jax
import jax.numpy as jnp
from jax.experimental import pallas as pl
from jax.experimental.pallas import tpu as pltpu


def _infonce_kernel(pos_ref, neg_ref, lse_ref, negsum_ref, possum_ref,
                    *, tau: float, b: int, tm: int, need_mask: bool):
    step = pl.program_id(0)

    # Native-dtype tiles are DMA'd in; upcast to f32 only inside the kernel.
    neg = neg_ref[...].astype(jnp.float32)        # (tm, b)
    pos_row = pos_ref[...].astype(jnp.float32)    # (1, b) lane-dense

    # Global row index of each sublane in this tile.
    col_ids = jax.lax.broadcasted_iota(jnp.int32, (tm, b), 1)              # (tm, b)
    row_idx = jax.lax.broadcasted_iota(jnp.int32, (tm, 1), 0) + step * tm  # (tm, 1)

    # Diagonal substitution with a single compare + select.  pos_row (1, b)
    # broadcasts down sublanes, so at (i, j == global_row_i) the selected
    # value is pos[global_row_i] — exactly the diagonal replacement.
    logits = jnp.where(col_ids == row_idx, pos_row, neg)                   # (tm, b)

    # Fused temperature scale inside the stable logsumexp:
    #   lse_scaled = max/tau + log(sum(exp((x - max)/tau)))
    inv_tau = 1.0 / tau
    row_max = jnp.max(logits, axis=-1, keepdims=True)                      # (tm, 1)
    s = jnp.sum(jnp.exp((logits - row_max) * inv_tau),
                axis=-1, keepdims=True)                                    # (tm, 1)
    lse = row_max * inv_tau + jnp.log(s)                                   # (tm, 1)

    # Per-row sums of the raw neg similarities (mean(neg_sim) includes diag).
    neg_rows = jnp.sum(neg, axis=-1, keepdims=True)                        # (tm, 1)

    if need_mask:  # only traced when b % tm != 0 (padded last tile)
        valid = row_idx < b
        lse = jnp.where(valid, lse, 0.0)
        neg_rows = jnp.where(valid, neg_rows, 0.0)

    # Per-tile partial sums (three tiny scalar stores per grid step).
    lse_ref[...] = jnp.sum(lse, axis=0, keepdims=True).reshape(1, 1, 1)
    negsum_ref[...] = jnp.sum(neg_rows, axis=0, keepdims=True).reshape(1, 1, 1)
    possum_ref[...] = jnp.sum(pos_row, axis=-1, keepdims=True).reshape(1, 1, 1)


def _choose_tm(b: int, itemsize: int, target_block_bytes: int = 4 * 1024 * 1024) -> int:
    """Row-tile size: single full block if small, else ~4 MiB per neg block
    (double-buffered by Pallas -> ~8 MiB), always a multiple of 8 sublanes so
    the (8, 128) BlockSpec constraint is honored."""
    if b * b * itemsize <= target_block_bytes:
        return b
    tm = (target_block_bytes // (b * itemsize)) // 8 * 8
    return int(max(8, min(tm, b)))


def infonce_forward(pos_sim: jax.Array, neg_sim: jax.Array, tau: float = 0.1):
    """Pallas implementation of InfoNCE.forward (sim_extra_obj=None path).

    Returns [mean(pos_sim), mean(neg_sim), cross_entropy_loss] as f32 scalars.
    """
    b = neg_sim.shape[0]
    assert pos_sim.shape == (b, 1), pos_sim.shape
    assert neg_sim.shape == (b, b), neg_sim.shape

    # Lane-dense positive row (cheap reshape; no dtype cast — upcast in-kernel).
    pos_row = pos_sim.reshape(1, b)

    itemsize = jnp.dtype(neg_sim.dtype).itemsize
    tm = _choose_tm(b, itemsize)
    nblocks = pl.cdiv(b, tm)
    need_mask = (b % tm) != 0

    kernel = functools.partial(
        _infonce_kernel, tau=float(tau), b=b, tm=tm, need_mask=need_mask)

    out_shapes = tuple(
        jax.ShapeDtypeStruct((nblocks, 1, 1), jnp.float32) for _ in range(3))
    out_specs = tuple(
        pl.BlockSpec((1, 1, 1), lambda i: (i, 0, 0)) for _ in range(3))

    cost = pl.CostEstimate(
        flops=6 * b * b,
        transcendentals=b * b + b,
        bytes_accessed=b * b * itemsize
        + b * jnp.dtype(pos_sim.dtype).itemsize
        + 3 * nblocks * 4,
    )

    lse_sums, neg_sums, pos_sums = pl.pallas_call(
        kernel,
        out_shape=out_shapes,
        grid=(nblocks,),
        in_specs=[
            pl.BlockSpec((1, b), lambda i: (0, 0)),    # pos row, resident
            pl.BlockSpec((tm, b), lambda i: (i, 0)),   # streamed row tile
        ],
        out_specs=out_specs,
        compiler_params=pltpu.CompilerParams(
            dimension_semantics=("parallel",)),        # per-tile partials -> megacore OK
        cost_estimate=cost,
    )(pos_row, neg_sim)

    # Tiny final reduction over nblocks partials in the wrapper.
    b_f = jnp.float32(b)
    pos_mean = pos_sums[0, 0, 0] / b_f
    neg_mean = jnp.sum(neg_sums) / (b_f * b_f)
    loss = jnp.sum(lse_sums) / b_f - pos_mean / jnp.float32(tau)
    return [pos_mean, neg_mean, loss]


def _reference(pos_sim, neg_sim, tau=0.1):
    """Pure-JAX reference mirroring the PyTorch module."""
    b = neg_sim.shape[0]
    eye = jnp.eye(b, dtype=jnp.float32)
    logits = (1.0 - eye) * neg_sim.astype(jnp.float32) + eye * pos_sim.astype(jnp.float32)
    logits = logits / tau
    logp = jax.nn.log_softmax(logits, axis=-1)
    loss = -jnp.mean(logp[jnp.arange(b), jnp.arange(b)])
    return [jnp.mean(pos_sim.astype(jnp.float32)),
            jnp.mean(neg_sim.astype(jnp.float32)), loss]


if __name__ == "__main__":
    key = jax.random.PRNGKey(0)
    B = 8
    k1, k2 = jax.random.split(key)
    pos_sim = jax.random.normal(k1, (B, 1), dtype=jnp.float32)
    neg_sim = jax.random.normal(k2, (B, B), dtype=jnp.float32)

    out = infonce_forward(pos_sim, neg_sim, tau=0.1)
    out = [jax.block_until_ready(o) for o in out]

    ref = _reference(pos_sim, neg_sim, tau=0.1)
    for o, r in zip(out, ref):
        assert jnp.allclose(o, r, atol=1e-5, rtol=1e-5), (o, r)

    print("KERNEL_OK")
</pallas_src>

<mosaic_0001>
module attributes {stable_mosaic.version = 11 : i64} {
  func.func @_infonce_kernel(%arg0: i32, %arg1: memref<1x8xf32, #tpu.memory_space<vmem>>, %arg2: memref<8x8xf32, #tpu.memory_space<vmem>>, %arg3: memref<1x1x1xf32, #tpu.memory_space<vmem>>, %arg4: memref<1x1x1xf32, #tpu.memory_space<vmem>>, %arg5: memref<1x1x1xf32, #tpu.memory_space<vmem>>) attributes {dimension_semantics = [#tpu.dimension_semantics<parallel>], iteration_bounds = array<i64: 1>, scalar_prefetch = 0 : i64, scratch_operands = 0 : i64, tpu.core_type = #tpu.core_type<tc>, window_params = [{pipeline_mode = #tpu.pipeline_mode<synchronous>, transform_indices = @transform_0, window_bounds = array<i64: 1, 8>}, {transform_indices = @transform_1, window_bounds = array<i64: 8, 8>}, {transform_indices = @transform_2, window_bounds = array<i64: 1, 1, 1>}, {transform_indices = @transform_3, window_bounds = array<i64: 1, 1, 1>}, {transform_indices = @transform_4, window_bounds = array<i64: 1, 1, 1>}]} {
    %c0 = arith.constant 0 : index
    %c0_0 = arith.constant 0 : index
    %0 = vector.load %arg2[%c0, %c0_0] : memref<8x8xf32, #tpu.memory_space<vmem>>, vector<8x8xf32>
    %c0_1 = arith.constant 0 : index
    %c0_2 = arith.constant 0 : index
    %1 = vector.load %arg1[%c0_1, %c0_2] : memref<1x8xf32, #tpu.memory_space<vmem>>, vector<1x8xf32>
    %2 = tpu.iota {dimensions = array<i32: 1>} : vector<8x8xi32>
    %3 = tpu.iota {dimensions = array<i32: 0>} : vector<8x1xi32>
    %c8_i32 = arith.constant 8 : i32
    %4 = arith.muli %arg0, %c8_i32 : i32
    %5 = vector.broadcast %4 : i32 to vector<8x1xi32>
    %6 = arith.addi %3, %5 : vector<8x1xi32>
    %7 = vector.broadcast %6 : vector<8x1xi32> to vector<8x8xi32>
    %8 = arith.cmpi eq, %2, %7 : vector<8x8xi32>
    %9 = vector.shape_cast %1 : vector<1x8xf32> to vector<1x8xf32>
    %10 = vector.broadcast %9 : vector<1x8xf32> to vector<8x8xf32>
    %11 = arith.select %8, %10, %0 : vector<8x8xi1>, vector<8x8xf32>
    %cst = arith.constant dense<0xFF800000> : vector<8xf32>
    %12 = vector.multi_reduction <maximumf>, %11, %cst [1] : vector<8x8xf32> to vector<8xf32>
    %13 = vector.shape_cast %12 : vector<8xf32> to vector<8x1xf32>
    %14 = vector.broadcast %13 : vector<8x1xf32> to vector<8x8xf32>
    %15 = arith.subf %11, %14 : vector<8x8xf32>
    %cst_3 = arith.constant 1.000000e+01 : f32
    %16 = vector.broadcast %cst_3 : f32 to vector<8x8xf32>
    %17 = arith.mulf %15, %16 : vector<8x8xf32>
    %18 = math.exp %17 : vector<8x8xf32>
    %cst_4 = arith.constant dense<0.000000e+00> : vector<8xf32>
    %19 = vector.multi_reduction <add>, %18, %cst_4 [1] : vector<8x8xf32> to vector<8xf32>
    %20 = vector.shape_cast %19 : vector<8xf32> to vector<8x1xf32>
    %cst_5 = arith.constant 1.000000e+01 : f32
    %21 = vector.broadcast %cst_5 : f32 to vector<8x1xf32>
    %22 = arith.mulf %13, %21 : vector<8x1xf32>
    %23 = math.log %20 : vector<8x1xf32>
    %24 = arith.addf %22, %23 : vector<8x1xf32>
    %cst_6 = arith.constant dense<0.000000e+00> : vector<8xf32>
    %25 = vector.multi_reduction <add>, %0, %cst_6 [1] : vector<8x8xf32> to vector<8xf32>
    %26 = vector.shape_cast %25 : vector<8xf32> to vector<8x1xf32>
    %cst_7 = arith.constant dense<0.000000e+00> : vector<1xf32>
    %27 = vector.multi_reduction <add>, %24, %cst_7 [0] : vector<8x1xf32> to vector<1xf32>
    %28 = vector.shape_cast %27 : vector<1xf32> to vector<1x1xf32>
    %29 = vector.shape_cast %28 : vector<1x1xf32> to vector<1x1x1xf32>
    %c0_8 = arith.constant 0 : index
    %c0_9 = arith.constant 0 : index
    %c0_10 = arith.constant 0 : index
    %30 = vector.load %arg3[%c0_8, %c0_9, %c0_10] : memref<1x1x1xf32, #tpu.memory_space<vmem>>, vector<1x1x1xf32>
    tpu.vector_store %arg3[%c0_8, %c0_9, %c0_10], %29 {strides = array<i32>} : memref<1x1x1xf32, #tpu.memory_space<vmem>>, vector<1x1x1xf32>,
    %cst_11 = arith.constant dense<0.000000e+00> : vector<1xf32>
    %31 = vector.multi_reduction <add>, %26, %cst_11 [0] : vector<8x1xf32> to vector<1xf32>
    %32 = vector.shape_cast %31 : vector<1xf32> to vector<1x1xf32>
    %33 = vector.shape_cast %32 : vector<1x1xf32> to vector<1x1x1xf32>
    %c0_12 = arith.constant 0 : index
    %c0_13 = arith.constant 0 : index
    %c0_14 = arith.constant 0 : index
    %34 = vector.load %arg4[%c0_12, %c0_13, %c0_14] : memref<1x1x1xf32, #tpu.memory_space<vmem>>, vector<1x1x1xf32>
    tpu.vector_store %arg4[%c0_12, %c0_13, %c0_14], %33 {strides = array<i32>} : memref<1x1x1xf32, #tpu.memory_space<vmem>>, vector<1x1x1xf32>,
    %cst_15 = arith.constant dense<0.000000e+00> : vector<1xf32>
    %35 = vector.multi_reduction <add>, %1, %cst_15 [1] : vector<1x8xf32> to vector<1xf32>
    %36 = vector.shape_cast %35 : vector<1xf32> to vector<1x1xf32>
    %37 = vector.shape_cast %36 : vector<1x1xf32> to vector<1x1x1xf32>
    %c0_16 = arith.constant 0 : index
    %c0_17 = arith.constant 0 : index
    %c0_18 = arith.constant 0 : index
    %38 = vector.load %arg5[%c0_16, %c0_17, %c0_18] : memref<1x1x1xf32, #tpu.memory_space<vmem>>, vector<1x1x1xf32>
    tpu.vector_store %arg5[%c0_16, %c0_17, %c0_18], %37 {strides = array<i32>} : memref<1x1x1xf32, #tpu.memory_space<vmem>>, vector<1x1x1xf32>,
    return
  }
  func.func @transform_0(%arg0: i32) -> (i32, i32) {
    %c0_i32 = arith.constant 0 : i32
    %c0_i32_0 = arith.constant 0 : i32
    %c0_i32_1 = arith.constant 0 : i32
    return %c0_i32, %c0_i32_0 : i32, i32
  }
  func.func @transform_1(%arg0: i32) -> (i32, i32) {
    %c0_i32 = arith.constant 0 : i32
    %c0_i32_0 = arith.constant 0 : i32
    return %arg0, %c0_i32 : i32, i32
  }
  func.func @transform_2(%arg0: i32) -> (i32, i32, i32) {
    %c0_i32 = arith.constant 0 : i32
    %c0_i32_0 = arith.constant 0 : i32
    %c0_i32_1 = arith.constant 0 : i32
    return %arg0, %c0_i32, %c0_i32_0 : i32, i32, i32
  }
  func.func @transform_3(%arg0: i32) -> (i32, i32, i32) {
    %c0_i32 = arith.constant 0 : i32
    %c0_i32_0 = arith.constant 0 : i32
    %c0_i32_1 = arith.constant 0 : i32
    return %arg0, %c0_i32, %c0_i32_0 : i32, i32, i32
  }
  func.func @transform_4(%arg0: i32) -> (i32, i32, i32) {
    %c0_i32 = arith.constant 0 : i32
    %c0_i32_0 = arith.constant 0 : i32
    %c0_i32_1 = arith.constant 0 : i32
    return %arg0, %c0_i32, %c0_i32_0 : i32, i32, i32
  }
}

</mosaic_0001>

<bundles_post_ra>
// kernel: tpu_custom_call.1
= control target key start
LH: loop header
LB: loop body
LE: loop exit
PB: predicated region body
PF: predicated region fallthrough
CT: control target
= control target key end

     0   :  { %10 = vsyncpa [#allocation3], 0  ;;  %s334_s0 = inlined_call_operand.hbm [shape: f32[1,8], index: 0, kind: input, shape index: {}]   ;;  %s335_s1 = inlined_call_operand.hbm [shape: f32[8,8], index: 1, kind: input, shape index: {}]   ;;  %s336_s2 = inlined_call_operand.hbm [shape: f32[1,1,1], index: 2, kind: output, shape index: {0}]   ;;  %s337_s3 = inlined_call_operand.hbm [shape: f32[1,1,1], index: 3, kind: output, shape index: {1}]   ;;  %s338_s4 = inlined_call_operand.hbm [shape: f32[1,1,1], index: 4, kind: output, shape index: {2}]  }
   0x1   :  { %11 = vsyncpa [#allocation6], 0 }
   0x2   :  { %12 = vsyncpa [#allocation4], 0 }
   0x3   :  { %13 = vsyncpa [#allocation9], 0  ;;  %s19_s17 = sshll.u32 %s334_s0, 4  ;;  %s283_s18 = smov [#allocation2]   ;;  %s20_s17 = int_to_ptr.hbm [resolvable:$true] %s19_s17 }
   0x4   :  { %s21_s19 = sshll.u32 %s283_s18, 4  ;;  %s30_s22 = sshll.u32 %s335_s1, 4  ;;  %s22_s19 = int_to_ptr.vmem [resolvable:$true] %s21_s19  ;;  %s31_s22 = int_to_ptr.hbm [resolvable:$true] %s30_s22 }
   0x5   :  { %24 = dma.hbm_to_vmem [thread:$0]  %s20_s17, 16, %s22_s19, [#allocation3]  }
   0x6   :  { %s284_s23 = smov [#allocation5]  }
   0x7   :  { %s32_s24 = sshll.u32 %s284_s23, 4  ;;  %s33_s24 = int_to_ptr.vmem [resolvable:$true] %s32_s24 }
   0x8   :  { %35 = dma.hbm_to_vmem [thread:$0]  %s31_s22, 128, %s33_s24, [#allocation6]  }
   0x9   :  { %275 = dma.done.wait [#allocation3], 16  }
   0xa   :  { %276 = vsyncadd [#allocation3], 4294967280 }
   0xb   :  { %277 = dma.done.wait [#allocation6], 128  }
   0xc   :  { %278 = vsyncadd [#allocation6], 4294967168  ;;  %v46_v0 = vlaneseq  ;;  %v44_v3 = vld [vmem:[#allocation5] sm:$0xff]  ;;  %v150_v4 = vld [vmem:[#allocation2] ss:$0 sm:$0xff]  ;;  %vm58_vm1 = vcmask 64512  }
   0xd   :  { %v73_v7 = vsel %vm58_vm1, %v44_v3, 0.0  ;;  %v45_v8 = vld [vmem:[#allocation2] sm:$0x1]  ;;  %vm91_vm2 = vcmask 57344   ;;  %s285_s0 = smov [#allocation8]   ;;  %s114_s27 = sshll.u32 %s337_s3, 4  ;;  %s115_s27 = int_to_ptr.hbm [resolvable:$true] %s114_s27 }
   0xe   :  { %v47_v1 = vand.u32 127, %v46_v0  ;;  %v49_v2 = vshrl.u32 %v46_v0, 7  ;;  %74 = vadd.xlane.f32.xlu1 %v73_v7  ;;  %v92_v9 = vsel %vm91_vm2, %v45_v8, 0.0  ;;  %s112_s1 = sshll.u32 %s285_s0, 4  ;;  %vm82_vm3 = vcmask 0   ;;  %s286_s28 = smov [#allocation10]   ;;  %s113_s1 = int_to_ptr.vmem [resolvable:$true] %s112_s1 }
   0xf   :  { %s123_s29 = sshll.u32 %s286_s28, 4  ;;  %s125_s6 = sshll.u32 %s338_s4, 4  ;;  %s124_s29 = int_to_ptr.vmem [resolvable:$true] %s123_s29  ;;  %s126_s6 = int_to_ptr.hbm [resolvable:$true] %s125_s6 }
  0x10   :  { %vm53_vm0 = vcmp.eq.s32.totalorder %v47_v1, %v49_v2  ;;  %s287_s3 = smov [#allocation7]   ;;  %s103_s9 = sshll.u32 %s336_s2, 4  ;;  %s104_s9 = int_to_ptr.hbm [resolvable:$true] %s103_s9 }
  0x11   :  { %v57_v5 = vsel %vm53_vm0, %v150_v4, %v44_v3  ;;  %s101_s4 = sshll.u32 %s287_s3, 4  ;;  %s102_s4 = int_to_ptr.vmem [resolvable:$true] %s101_s4 }
  0x12   :  { %v59_v6 = vsel %vm58_vm1, %v57_v5, -inf }
  0x13   :  { %60 = vmax.xlane.f32.xlu0 %v59_v6 }
  0x16   :  { %93 = vadd.xlane.f32.xlu1 %v92_v9 }
  0x81   :  { %v75_v16 = vpop.xlane.xlu1 %74 }
  0x82   :  { %v84_v17 = vrot.slane %v75_v16, 4 }
  0x84   :  { %v85_v18 = vadd.f32 %v84_v17, %v75_v16 }
  0x86   :  { %v61_v10 = vpop.xlane.xlu0 %60  ;;  %v86_v19 = vrot.slane %v85_v18, 2 }
  0x87   :  { %v62_v11 = vsub.f32 %v57_v5, %v61_v10  ;;  %v69_v26 = vmul.f32 10.0, %v61_v10 }
  0x88   :  { %v87_v20 = vadd.f32 %v86_v19, %v85_v18 }
  0x89   :  { %v63_v12 = vmul.f32 10.0, %v62_v11  ;;  %v94_v23 = vpop.xlane.xlu1 %93 }
  0x8a   :  { %v88_v21 = vrot.slane %v87_v20, 1  ;;  %95 = vst.msk [vmem:[#allocation10] sm:$0x1] %vm82_vm3, %v94_v23 }
  0x8b   :  { %v64_v13 = vmul.f32 1.442695, %v63_v12 }
  0x8c   :  { %v89_v22 = vadd.f32 %v88_v21, %v87_v20 }
  0x8d   :  { %151 = vpow2.f32 %v64_v13 }
  0x8e   :  { %90 = vst.msk [vmem:[#allocation8] sm:$0x1] %vm82_vm3, %v89_v22 }
  0x8f   :  { %117 = dma.vmem_to_hbm [thread:$0]  %s113_s1, 16, %s115_s27, [#allocation9]  }
  0x90   :  { %128 = dma.vmem_to_hbm [thread:$0]  %s124_s29, 16, %s126_s6, [#allocation9]  }
  0x93   :  { %v152_v14 = vpop.eup %151 }
  0x94   :  { %v66_v15 = vsel %vm58_vm1, %v152_v14, 0.0 }
  0x95   :  { %67 = vadd.xlane.f32.xlu0 %v66_v15 }
 0x108   :  { %v68_v24 = vpop.xlane.xlu0 %67 }
 0x109   :  { %153 = vlog2.f32 %v68_v24 }
 0x10f   :  { %v154_v25 = vpop.eup %153 }
 0x110   :  { %v71_v27 = vmul.f32 0.6931472, %v154_v25 }
 0x112   :  { %v72_v28 = vadd.f32 %v71_v27, %v69_v26 }
 0x114   :  { %v76_v29 = vrot.slane %v72_v28, 4 }
 0x116   :  { %v77_v30 = vadd.f32 %v76_v29, %v72_v28 }
 0x118   :  { %v78_v31 = vrot.slane %v77_v30, 2 }
 0x11a   :  { %v79_v32 = vadd.f32 %v78_v31, %v77_v30 }
 0x11c   :  { %v80_v33 = vrot.slane %v79_v32, 1 }
 0x11e   :  { %v81_v34 = vadd.f32 %v80_v33, %v79_v32 }
 0x120   :  { %83 = vst.msk [vmem:[#allocation7] sm:$0x1] %vm82_vm3, %v81_v34 }
 0x121   :  { %106 = dma.vmem_to_hbm [thread:$0]  %s102_s4, 16, %s104_s9, [#allocation4]  }
 0x122   :  { %279 = dma.done.wait [#allocation4], 16  }
 0x123   :  { %280 = vsyncadd [#allocation4], 4294967280 }
 0x124   :  { %281 = dma.done.wait [#allocation9], 32  }
 0x125   :  { %282 = vsyncadd [#allocation9], 4294967264 }
 0x126   :  { %141 = vsyncpa [#allocation3], 1 }
 0x127   :  { %142 = vsyncpa [#allocation6], 1 }
 0x128   :  { %143 = vsyncpa [#allocation4], 1 }
 0x129   :  { %144 = vsyncpa [#allocation9], 1 }

</bundles_post_ra>
